<compile_context>
chip_gen: v7x
topology: tpu7x:2x2x1
jax: 0.10.0
libtpu: 0.0.40
codegen_flags: <defaults>
</compile_context>

<pallas_src>
import jax
import jax.numpy as jnp
from jax import lax
from jax.experimental import pallas as pl
from jax.experimental.pallas import tpu as pltpu

EPS = 1e-5  # nn.BatchNorm1d default eps


# ---------------------------------------------------------------------------
# Fused kernel: FeatureFusionModule + RefinementModule (eval mode), per batch tile.
# ---------------------------------------------------------------------------
def _uncertainty_kernel(x_ref, y_ref,
                        wp_ref, bp_ref, wr_ref, br_ref,
                        w1r_ref, w1p_ref, b1_ref,
                        w2_ref, b2_ref, w3_ref, b3_ref,
                        wl_ref, bl_ref, out_ref):
    f32 = jnp.float32
    # FeatureFusionModule (input dropouts are identity in eval mode).
    pred = jnp.dot(x_ref[...], wp_ref[...], preferred_element_type=f32) + bp_ref[...]
    pred = jnp.maximum(pred, 0.0)                     # (TB, Cf)
    rgb = jnp.dot(y_ref[...], wr_ref[...], preferred_element_type=f32) + br_ref[...]
    rgb = jnp.maximum(rgb, 0.0)                       # (TB, Cf)

    # concat([rgb, pred], 1) @ W1  ==  rgb @ W1[:Cf] + pred @ W1[Cf:]  (concat fused away)
    h = (jnp.dot(rgb, w1r_ref[...], preferred_element_type=f32)
         + jnp.dot(pred, w1p_ref[...], preferred_element_type=f32)
         + b1_ref[...])
    h = jnp.maximum(h, 0.0)                           # (TB, 128)
    h = jnp.maximum(jnp.dot(h, w2_ref[...], preferred_element_type=f32) + b2_ref[...], 0.0)
    h = jnp.maximum(jnp.dot(h, w3_ref[...], preferred_element_type=f32) + b3_ref[...], 0.0)

    # RefinementModule: dropout(0.4) is identity in eval mode.
    # RefinementModule.last: Linear(16, 1, bias=True).  D_out == 1, so use a VPU
    # multiply + lane reduce (no N=1 MXU matmul) and store lane-dense (1, TB).
    o = jnp.sum(h * wl_ref[...], axis=1)              # (TB,)
    out_ref[...] = (o[None, :] + bl_ref[...]).astype(out_ref.dtype)


# ---------------------------------------------------------------------------
# Wrapper: folds eval-mode BatchNorm into the (pre-transposed) weights, tiles
# over the batch, keeps all parameters resident in VMEM.
# ---------------------------------------------------------------------------
def _fold_linear_bn(W, gamma, beta, mean, var, eps=EPS):
    """Linear(in,out,bias=False) -> BatchNorm1d(out) (eval) folded to (W_t, shift)
    such that y = x @ W_t + shift.  W_t is (in, out), shift is (1, out)."""
    scale = gamma * lax.rsqrt(var + eps)                        # (out,)
    w_t = (W * scale[:, None]).T.astype(jnp.float32)            # (in, out)
    shift = (beta - mean * scale).reshape(1, -1).astype(jnp.float32)
    return w_t, shift


def uncertainty_estimator_forward(x_pred, y_rgb, params, *, tb=512,
                                  compute_dtype=jnp.float32):
    """Eval-mode UncertaintyEstimator forward for a single scale.
    x_pred: (B, C1), y_rgb: (B, C2).  Returns (B, 1) float32."""
    B, C1 = x_pred.shape
    B2, C2 = y_rgb.shape
    assert B == B2, "pred / rgb batch sizes must match"
    assert B % 128 == 0, "pad the (flattened pixel) batch to a multiple of 128"

    # Batch tile: multiple of 128 (lane-dense output) that divides B.
    tb = max(128, (min(tb, B) // 128) * 128)
    while B % tb:
        tb -= 128
    n_tiles = B // tb

    p = params
    Wp_t, bp = _fold_linear_bn(p["Wp"], *p["bn_p"])   # (C1, Cf), (1, Cf)
    Wr_t, br = _fold_linear_bn(p["Wr"], *p["bn_r"])   # (C2, Cf), (1, Cf)
    W1_t, b1 = _fold_linear_bn(p["W1"], *p["bn1"])    # (2*Cf, 128), (1, 128)
    W2_t, b2 = _fold_linear_bn(p["W2"], *p["bn2"])    # (128, 64), (1, 64)
    W3_t, b3 = _fold_linear_bn(p["W3"], *p["bn3"])    # (64, 16), (1, 16)
    Cf = Wr_t.shape[1]
    assert W1_t.shape[0] == 2 * Cf
    W1r_t = W1_t[:Cf]                                  # rows for the rgb half of the concat
    W1p_t = W1_t[Cf:]                                  # rows for the pred half
    wl = p["Wl"].reshape(1, -1).astype(jnp.float32)    # (1, 16)
    bl = p["bl"].reshape(1, 1).astype(jnp.float32)     # (1, 1)

    # Optional bf16 streaming of the big inputs (f32 accumulation in-kernel).
    xp = x_pred.astype(compute_dtype)
    xr = y_rgb.astype(compute_dtype)
    Wp_c = Wp_t.astype(compute_dtype)
    Wr_c = Wr_t.astype(compute_dtype)

    def resident(a):   # whole array, same block every grid step -> stays in VMEM
        return pl.BlockSpec(a.shape, lambda i: (0,) * a.ndim)

    in_specs = [
        pl.BlockSpec((tb, C1), lambda i: (i, 0)),      # x stream (double-buffered)
        pl.BlockSpec((tb, C2), lambda i: (i, 0)),      # y stream (double-buffered)
        resident(Wp_c), resident(bp),
        resident(Wr_c), resident(br),
        resident(W1r_t), resident(W1p_t), resident(b1),
        resident(W2_t), resident(b2),
        resident(W3_t), resident(b3),
        resident(wl), resident(bl),
    ]

    out_row = pl.pallas_call(
        _uncertainty_kernel,
        out_shape=jax.ShapeDtypeStruct((1, B), jnp.float32),   # lane-dense output slab
        grid=(n_tiles,),
        in_specs=in_specs,
        out_specs=pl.BlockSpec((1, tb), lambda i: (0, i)),
        compiler_params=pltpu.CompilerParams(
            dimension_semantics=("parallel",)),                # batch tiles are independent
    )(xp, xr, Wp_c, bp, Wr_c, br, W1r_t, W1p_t, b1, W2_t, b2, W3_t, b3, wl, bl)

    return out_row.reshape(B, 1)


# ---------------------------------------------------------------------------
# Plain-JAX reference (eval-mode math, unfolded BN) and parameter init.
# ---------------------------------------------------------------------------
def _block_linear_bn_relu_ref(x, W, bn):
    gamma, beta, mean, var = bn
    z = x @ W.T
    z = (z - mean) * lax.rsqrt(var + EPS) * gamma + beta
    return jnp.maximum(z, 0.0)


def uncertainty_estimator_ref(x_pred, y_rgb, p):
    rgb = _block_linear_bn_relu_ref(y_rgb, p["Wr"], p["bn_r"])
    pred = _block_linear_bn_relu_ref(x_pred, p["Wp"], p["bn_p"])
    ft = jnp.concatenate([rgb, pred], axis=1)
    h = _block_linear_bn_relu_ref(ft, p["W1"], p["bn1"])
    h = _block_linear_bn_relu_ref(h, p["W2"], p["bn2"])
    h = _block_linear_bn_relu_ref(h, p["W3"], p["bn3"])
    return h @ p["Wl"].T + p["bl"]


def init_params(key, C1, C2):
    """pred_ch=[C1], rgb_ch=[C2]; Cf = (C1+C2)//16; refinement input = 2*Cf."""
    Cf = (C1 + C2) // 16
    ks = jax.random.split(key, 12)

    def linear_w(k, out_f, in_f):
        bound = 1.0 / jnp.sqrt(jnp.float32(in_f))
        return jax.random.uniform(k, (out_f, in_f), jnp.float32, -bound, bound)

    def bn(k, n):
        k1, k2, k3, k4 = jax.random.split(k, 4)
        gamma = 1.0 + 0.1 * jax.random.normal(k1, (n,), jnp.float32)
        beta = 0.1 * jax.random.normal(k2, (n,), jnp.float32)
        mean = 0.1 * jax.random.normal(k3, (n,), jnp.float32)
        var = jax.random.uniform(k4, (n,), jnp.float32, minval=0.5, maxval=1.5)
        return (gamma, beta, mean, var)

    return dict(
        Wp=linear_w(ks[0], Cf, C1), bn_p=bn(ks[1], Cf),        # FeatureFusion.linear_pred
        Wr=linear_w(ks[2], Cf, C2), bn_r=bn(ks[3], Cf),        # FeatureFusion.linear_rgb
        W1=linear_w(ks[4], 128, 2 * Cf), bn1=bn(ks[5], 128),   # RefinementModule.est[0]
        W2=linear_w(ks[6], 64, 128), bn2=bn(ks[7], 64),        # RefinementModule.est[1]
        W3=linear_w(ks[8], 16, 64), bn3=bn(ks[9], 16),         # RefinementModule.est[2]
        Wl=linear_w(ks[10], 1, 16),                            # RefinementModule.last
        bl=0.1 * jax.random.normal(ks[11], (1,), jnp.float32),
    )


if __name__ == "__main__":
    # Single scale: pred_ch=[64], rgb_ch=[64] -> Cf=8, refinement 16->128->64->16->1.
    B, C1, C2 = 512, 64, 64

    key = jax.random.PRNGKey(0)
    kx, ky, kp = jax.random.split(key, 3)
    x_pred = jax.random.normal(kx, (B, C1), jnp.float32)
    y_rgb = jax.random.normal(ky, (B, C2), jnp.float32)
    params = init_params(kp, C1, C2)

    # tb=128 -> 4 grid steps (exercises the batch pipeline even at this toy size).
    out = uncertainty_estimator_forward(x_pred, y_rgb, params, tb=128)
    out = jax.block_until_ready(out)

    ref = uncertainty_estimator_ref(x_pred, y_rgb, params)
    assert out.shape == (B, 1)
    # Tolerance covers TPU default matmul precision + BN folding reassociation.
    max_err = float(jnp.max(jnp.abs(out - ref)))
    assert jnp.allclose(out, ref, atol=1e-2, rtol=1e-2), max_err

    print("KERNEL_OK")
</pallas_src>

<mosaic_0001>
module attributes {stable_mosaic.version = 11 : i64} {
  func.func @_uncertainty_kernel(%arg0: i32, %arg1: memref<128x64xf32, #tpu.memory_space<vmem>>, %arg2: memref<128x64xf32, #tpu.memory_space<vmem>>, %arg3: memref<64x8xf32, #tpu.memory_space<vmem>>, %arg4: memref<1x8xf32, #tpu.memory_space<vmem>>, %arg5: memref<64x8xf32, #tpu.memory_space<vmem>>, %arg6: memref<1x8xf32, #tpu.memory_space<vmem>>, %arg7: memref<8x128xf32, #tpu.memory_space<vmem>>, %arg8: memref<8x128xf32, #tpu.memory_space<vmem>>, %arg9: memref<1x128xf32, #tpu.memory_space<vmem>>, %arg10: memref<128x64xf32, #tpu.memory_space<vmem>>, %arg11: memref<1x64xf32, #tpu.memory_space<vmem>>, %arg12: memref<64x16xf32, #tpu.memory_space<vmem>>, %arg13: memref<1x16xf32, #tpu.memory_space<vmem>>, %arg14: memref<1x16xf32, #tpu.memory_space<vmem>>, %arg15: memref<1x1xf32, #tpu.memory_space<vmem>>, %arg16: memref<1x128xf32, #tpu.memory_space<vmem>>) attributes {dimension_semantics = [#tpu.dimension_semantics<parallel>], iteration_bounds = array<i64: 4>, scalar_prefetch = 0 : i64, scratch_operands = 0 : i64, tpu.core_type = #tpu.core_type<tc>, window_params = [{transform_indices = @transform_0, window_bounds = array<i64: 128, 64>}, {transform_indices = @transform_1, window_bounds = array<i64: 128, 64>}, {pipeline_mode = #tpu.pipeline_mode<synchronous>, transform_indices = @transform_2, window_bounds = array<i64: 64, 8>}, {pipeline_mode = #tpu.pipeline_mode<synchronous>, transform_indices = @transform_3, window_bounds = array<i64: 1, 8>}, {pipeline_mode = #tpu.pipeline_mode<synchronous>, transform_indices = @transform_4, window_bounds = array<i64: 64, 8>}, {pipeline_mode = #tpu.pipeline_mode<synchronous>, transform_indices = @transform_5, window_bounds = array<i64: 1, 8>}, {pipeline_mode = #tpu.pipeline_mode<synchronous>, transform_indices = @transform_6, window_bounds = array<i64: 8, 128>}, {pipeline_mode = #tpu.pipeline_mode<synchronous>, transform_indices = @transform_7, window_bounds = array<i64: 8, 128>}, {pipeline_mode = #tpu.pipeline_mode<synchronous>, transform_indices = @transform_8, window_bounds = array<i64: 1, 128>}, {pipeline_mode = #tpu.pipeline_mode<synchronous>, transform_indices = @transform_9, window_bounds = array<i64: 128, 64>}, {pipeline_mode = #tpu.pipeline_mode<synchronous>, transform_indices = @transform_10, window_bounds = array<i64: 1, 64>}, {pipeline_mode = #tpu.pipeline_mode<synchronous>, transform_indices = @transform_11, window_bounds = array<i64: 64, 16>}, {pipeline_mode = #tpu.pipeline_mode<synchronous>, transform_indices = @transform_12, window_bounds = array<i64: 1, 16>}, {pipeline_mode = #tpu.pipeline_mode<synchronous>, transform_indices = @transform_13, window_bounds = array<i64: 1, 16>}, {pipeline_mode = #tpu.pipeline_mode<synchronous>, transform_indices = @transform_14, window_bounds = array<i64: 1, 1>}, {transform_indices = @transform_15, window_bounds = array<i64: 1, 128>}]} {
    %c0 = arith.constant 0 : index
    %c0_0 = arith.constant 0 : index
    %0 = vector.load %arg1[%c0, %c0_0] : memref<128x64xf32, #tpu.memory_space<vmem>>, vector<128x64xf32>
    %c0_1 = arith.constant 0 : index
    %c0_2 = arith.constant 0 : index
    %1 = vector.load %arg3[%c0_1, %c0_2] : memref<64x8xf32, #tpu.memory_space<vmem>>, vector<64x8xf32>
    %cst = arith.constant dense<0.000000e+00> : vector<128x8xf32>
    %2 = tpu.matmul %0, %1, %cst {dimension_numbers = #tpu.dot_dimension_numbers<[1], [0], [0], [1], [0, 0, 1, 1], [], []>} : vector<128x64xf32>, vector<64x8xf32>, vector<128x8xf32> -> vector<128x8xf32>
    %c0_3 = arith.constant 0 : index
    %c0_4 = arith.constant 0 : index
    %3 = vector.load %arg4[%c0_3, %c0_4] : memref<1x8xf32, #tpu.memory_space<vmem>>, vector<1x8xf32>
    %4 = vector.broadcast %3 : vector<1x8xf32> to vector<128x8xf32>
    %5 = arith.addf %2, %4 : vector<128x8xf32>
    %cst_5 = arith.constant 0.000000e+00 : f32
    %6 = vector.broadcast %cst_5 : f32 to vector<128x8xf32>
    %7 = arith.maximumf %5, %6 : vector<128x8xf32>
    %c0_6 = arith.constant 0 : index
    %c0_7 = arith.constant 0 : index
    %8 = vector.load %arg2[%c0_6, %c0_7] : memref<128x64xf32, #tpu.memory_space<vmem>>, vector<128x64xf32>
    %c0_8 = arith.constant 0 : index
    %c0_9 = arith.constant 0 : index
    %9 = vector.load %arg5[%c0_8, %c0_9] : memref<64x8xf32, #tpu.memory_space<vmem>>, vector<64x8xf32>
    %cst_10 = arith.constant dense<0.000000e+00> : vector<128x8xf32>
    %10 = tpu.matmul %8, %9, %cst_10 {dimension_numbers = #tpu.dot_dimension_numbers<[1], [0], [0], [1], [0, 0, 1, 1], [], []>} : vector<128x64xf32>, vector<64x8xf32>, vector<128x8xf32> -> vector<128x8xf32>
    %c0_11 = arith.constant 0 : index
    %c0_12 = arith.constant 0 : index
    %11 = vector.load %arg6[%c0_11, %c0_12] : memref<1x8xf32, #tpu.memory_space<vmem>>, vector<1x8xf32>
    %12 = vector.broadcast %11 : vector<1x8xf32> to vector<128x8xf32>
    %13 = arith.addf %10, %12 : vector<128x8xf32>
    %cst_13 = arith.constant 0.000000e+00 : f32
    %14 = vector.broadcast %cst_13 : f32 to vector<128x8xf32>
    %15 = arith.maximumf %13, %14 : vector<128x8xf32>
    %c0_14 = arith.constant 0 : index
    %c0_15 = arith.constant 0 : index
    %16 = vector.load %arg7[%c0_14, %c0_15] : memref<8x128xf32, #tpu.memory_space<vmem>>, vector<8x128xf32>
    %cst_16 = arith.constant dense<0.000000e+00> : vector<128x128xf32>
    %17 = tpu.matmul %15, %16, %cst_16 {dimension_numbers = #tpu.dot_dimension_numbers<[1], [0], [0], [1], [0, 0, 1, 1], [], []>} : vector<128x8xf32>, vector<8x128xf32>, vector<128x128xf32> -> vector<128x128xf32>
    %c0_17 = arith.constant 0 : index
    %c0_18 = arith.constant 0 : index
    %18 = vector.load %arg8[%c0_17, %c0_18] : memref<8x128xf32, #tpu.memory_space<vmem>>, vector<8x128xf32>
    %cst_19 = arith.constant dense<0.000000e+00> : vector<128x128xf32>
    %19 = tpu.matmul %7, %18, %cst_19 {dimension_numbers = #tpu.dot_dimension_numbers<[1], [0], [0], [1], [0, 0, 1, 1], [], []>} : vector<128x8xf32>, vector<8x128xf32>, vector<128x128xf32> -> vector<128x128xf32>
    %20 = arith.addf %17, %19 : vector<128x128xf32>
    %c0_20 = arith.constant 0 : index
    %c0_21 = arith.constant 0 : index
    %21 = vector.load %arg9[%c0_20, %c0_21] : memref<1x128xf32, #tpu.memory_space<vmem>>, vector<1x128xf32>
    %22 = vector.broadcast %21 : vector<1x128xf32> to vector<128x128xf32>
    %23 = arith.addf %20, %22 : vector<128x128xf32>
    %cst_22 = arith.constant 0.000000e+00 : f32
    %24 = vector.broadcast %cst_22 : f32 to vector<128x128xf32>
    %25 = arith.maximumf %23, %24 : vector<128x128xf32>
    %c0_23 = arith.constant 0 : index
    %c0_24 = arith.constant 0 : index
    %26 = vector.load %arg10[%c0_23, %c0_24] : memref<128x64xf32, #tpu.memory_space<vmem>>, vector<128x64xf32>
    %cst_25 = arith.constant dense<0.000000e+00> : vector<128x64xf32>
    %27 = tpu.matmul %25, %26, %cst_25 {dimension_numbers = #tpu.dot_dimension_numbers<[1], [0], [0], [1], [0, 0, 1, 1], [], []>} : vector<128x128xf32>, vector<128x64xf32>, vector<128x64xf32> -> vector<128x64xf32>
    %c0_26 = arith.constant 0 : index
    %c0_27 = arith.constant 0 : index
    %28 = vector.load %arg11[%c0_26, %c0_27] : memref<1x64xf32, #tpu.memory_space<vmem>>, vector<1x64xf32>
    %29 = vector.broadcast %28 : vector<1x64xf32> to vector<128x64xf32>
    %30 = arith.addf %27, %29 : vector<128x64xf32>
    %cst_28 = arith.constant 0.000000e+00 : f32
    %31 = vector.broadcast %cst_28 : f32 to vector<128x64xf32>
    %32 = arith.maximumf %30, %31 : vector<128x64xf32>
    %c0_29 = arith.constant 0 : index
    %c0_30 = arith.constant 0 : index
    %33 = vector.load %arg12[%c0_29, %c0_30] : memref<64x16xf32, #tpu.memory_space<vmem>>, vector<64x16xf32>
    %cst_31 = arith.constant dense<0.000000e+00> : vector<128x16xf32>
    %34 = tpu.matmul %32, %33, %cst_31 {dimension_numbers = #tpu.dot_dimension_numbers<[1], [0], [0], [1], [0, 0, 1, 1], [], []>} : vector<128x64xf32>, vector<64x16xf32>, vector<128x16xf32> -> vector<128x16xf32>
    %c0_32 = arith.constant 0 : index
    %c0_33 = arith.constant 0 : index
    %35 = vector.load %arg13[%c0_32, %c0_33] : memref<1x16xf32, #tpu.memory_space<vmem>>, vector<1x16xf32>
    %36 = vector.broadcast %35 : vector<1x16xf32> to vector<128x16xf32>
    %37 = arith.addf %34, %36 : vector<128x16xf32>
    %cst_34 = arith.constant 0.000000e+00 : f32
    %38 = vector.broadcast %cst_34 : f32 to vector<128x16xf32>
    %39 = arith.maximumf %37, %38 : vector<128x16xf32>
    %c0_35 = arith.constant 0 : index
    %c0_36 = arith.constant 0 : index
    %40 = vector.load %arg14[%c0_35, %c0_36] : memref<1x16xf32, #tpu.memory_space<vmem>>, vector<1x16xf32>
    %41 = vector.broadcast %40 : vector<1x16xf32> to vector<128x16xf32>
    %42 = arith.mulf %39, %41 : vector<128x16xf32>
    %cst_37 = arith.constant dense<0.000000e+00> : vector<128xf32>
    %43 = vector.multi_reduction <add>, %42, %cst_37 [1] : vector<128x16xf32> to vector<128xf32>
    %44 = vector.shape_cast %43 : vector<128xf32> to vector<1x128xf32>
    %c0_38 = arith.constant 0 : index
    %c0_39 = arith.constant 0 : index
    %45 = vector.load %arg15[%c0_38, %c0_39] : memref<1x1xf32, #tpu.memory_space<vmem>>, vector<1x1xf32>
    %46 = vector.broadcast %45 : vector<1x1xf32> to vector<1x128xf32>
    %47 = arith.addf %44, %46 : vector<1x128xf32>
    %c0_40 = arith.constant 0 : index
    %c0_41 = arith.constant 0 : index
    %48 = vector.load %arg16[%c0_40, %c0_41] : memref<1x128xf32, #tpu.memory_space<vmem>>, vector<1x128xf32>
    tpu.vector_store %arg16[%c0_40, %c0_41], %47 {strides = array<i32>} : memref<1x128xf32, #tpu.memory_space<vmem>>, vector<1x128xf32>,
    return
  }
  func.func @transform_0(%arg0: i32) -> (i32, i32) {
    %c0_i32 = arith.constant 0 : i32
    %c0_i32_0 = arith.constant 0 : i32
    return %arg0, %c0_i32 : i32, i32
  }
  func.func @transform_1(%arg0: i32) -> (i32, i32) {
    %c0_i32 = arith.constant 0 : i32
    %c0_i32_0 = arith.constant 0 : i32
    return %arg0, %c0_i32 : i32, i32
  }
  func.func @transform_2(%arg0: i32) -> (i32, i32) {
    %c0_i32 = arith.constant 0 : i32
    %c0_i32_0 = arith.constant 0 : i32
    %c0_i32_1 = arith.constant 0 : i32
    return %c0_i32, %c0_i32_0 : i32, i32
  }
  func.func @transform_3(%arg0: i32) -> (i32, i32) {
    %c0_i32 = arith.constant 0 : i32
    %c0_i32_0 = arith.constant 0 : i32
    %c0_i32_1 = arith.constant 0 : i32
    return %c0_i32, %c0_i32_0 : i32, i32
  }
  func.func @transform_4(%arg0: i32) -> (i32, i32) {
    %c0_i32 = arith.constant 0 : i32
    %c0_i32_0 = arith.constant 0 : i32
    %c0_i32_1 = arith.constant 0 : i32
    return %c0_i32, %c0_i32_0 : i32, i32
  }
  func.func @transform_5(%arg0: i32) -> (i32, i32) {
    %c0_i32 = arith.constant 0 : i32
    %c0_i32_0 = arith.constant 0 : i32
    %c0_i32_1 = arith.constant 0 : i32
    return %c0_i32, %c0_i32_0 : i32, i32
  }
  func.func @transform_6(%arg0: i32) -> (i32, i32) {
    %c0_i32 = arith.constant 0 : i32
    %c0_i32_0 = arith.constant 0 : i32
    %c0_i32_1 = arith.constant 0 : i32
    return %c0_i32, %c0_i32_0 : i32, i32
  }
  func.func @transform_7(%arg0: i32) -> (i32, i32) {
    %c0_i32 = arith.constant 0 : i32
    %c0_i32_0 = arith.constant 0 : i32
    %c0_i32_1 = arith.constant 0 : i32
    return %c0_i32, %c0_i32_0 : i32, i32
  }
  func.func @transform_8(%arg0: i32) -> (i32, i32) {
    %c0_i32 = arith.constant 0 : i32
    %c0_i32_0 = arith.constant 0 : i32
    %c0_i32_1 = arith.constant 0 : i32
    return %c0_i32, %c0_i32_0 : i32, i32
  }
  func.func @transform_9(%arg0: i32) -> (i32, i32) {
    %c0_i32 = arith.constant 0 : i32
    %c0_i32_0 = arith.constant 0 : i32
    %c0_i32_1 = arith.constant 0 : i32
    return %c0_i32, %c0_i32_0 : i32, i32
  }
  func.func @transform_10(%arg0: i32) -> (i32, i32) {
    %c0_i32 = arith.constant 0 : i32
    %c0_i32_0 = arith.constant 0 : i32
    %c0_i32_1 = arith.constant 0 : i32
    return %c0_i32, %c0_i32_0 : i32, i32
  }
  func.func @transform_11(%arg0: i32) -> (i32, i32) {
    %c0_i32 = arith.constant 0 : i32
    %c0_i32_0 = arith.constant 0 : i32
    %c0_i32_1 = arith.constant 0 : i32
    return %c0_i32, %c0_i32_0 : i32, i32
  }
  func.func @transform_12(%arg0: i32) -> (i32, i32) {
    %c0_i32 = arith.constant 0 : i32
    %c0_i32_0 = arith.constant 0 : i32
    %c0_i32_1 = arith.constant 0 : i32
    return %c0_i32, %c0_i32_0 : i32, i32
  }
  func.func @transform_13(%arg0: i32) -> (i32, i32) {
    %c0_i32 = arith.constant 0 : i32
    %c0_i32_0 = arith.constant 0 : i32
    %c0_i32_1 = arith.constant 0 : i32
    return %c0_i32, %c0_i32_0 : i32, i32
  }
  func.func @transform_14(%arg0: i32) -> (i32, i32) {
    %c0_i32 = arith.constant 0 : i32
    %c0_i32_0 = arith.constant 0 : i32
    %c0_i32_1 = arith.constant 0 : i32
    return %c0_i32, %c0_i32_0 : i32, i32
  }
  func.func @transform_15(%arg0: i32) -> (i32, i32) {
    %c0_i32 = arith.constant 0 : i32
    %c0_i32_0 = arith.constant 0 : i32
    return %c0_i32, %arg0 : i32, i32
  }
}

</mosaic_0001>

<bundles_post_ra>
// kernel: tpu_custom_call.1
= control target key start
LH: loop header
LB: loop body
LE: loop exit
PB: predicated region body
PF: predicated region fallthrough
CT: control target
= control target key end

     0   :  { %s3415_s0 = inlined_call_operand.vmem [shape: f32[512,64], index: 0, kind: input, shape index: {}]   ;;  %s3416_s1 = inlined_call_operand.vmem [shape: f32[512,64], index: 1, kind: input, shape index: {}]   ;;  %s3417_s2 = inlined_call_operand.vmem [shape: f32[64,8], index: 2, kind: input, shape index: {}]   ;;  %s3418_s3 = inlined_call_operand.vmem [shape: f32[1,8], index: 3, kind: input, shape index: {}]   ;;  %s3419_s4 = inlined_call_operand.vmem [shape: f32[64,8], index: 4, kind: input, shape index: {}]   ;;  %s3420_s5 = inlined_call_operand.vmem [shape: f32[1,8], index: 5, kind: input, shape index: {}]   ;;  %s3421_s6 = inlined_call_operand.vmem [shape: f32[8,128], index: 6, kind: input, shape index: {}]   ;;  %s3422_s7 = inlined_call_operand.vmem [shape: f32[8,128], index: 7, kind: input, shape index: {}]   ;;  %s3423_s8 = inlined_call_operand.vmem [shape: f32[1,128], index: 8, kind: input, shape index: {}]   ;;  %s3424_s9 = inlined_call_operand.vmem [shape: f32[128,64], index: 9, kind: input, shape index: {}]   ;;  %s3425_s10 = inlined_call_operand.vmem [shape: f32[1,64], index: 10, kind: input, shape index: {}]   ;;  %s3426_s11 = inlined_call_operand.vmem [shape: f32[64,16], index: 11, kind: input, shape index: {}]   ;;  %s3427_s12 = inlined_call_operand.vmem [shape: f32[1,16], index: 12, kind: input, shape index: {}]   ;;  %s3428_s13 = inlined_call_operand.vmem [shape: f32[1,16], index: 13, kind: input, shape index: {}]   ;;  %s3429_s14 = inlined_call_operand.<no memory space> [shape: f32[1,1], index: 14, kind: input, shape index: {}]   ;;  %s3430_s15 = inlined_call_operand.hbm [shape: f32[1,512], index: 15, kind: output, shape index: {}]  }
   0x1   :  { %v20_v0 = vstv %s3429_s14 }
   0x2   :  { %21 = vst [vmem:[#allocation2] sm:$0x1] %v20_v0 }
   0x3   :  { %22 = vsyncpa [#allocation4], 0 }
   0x4   :  { %24 = vsyncpa [#allocation4 + $0x1], 0  ;;  %s2892_s20 = smov 0   ;;  %s2894_s21 = smov 0  }
   0x5   :  { %s2896_s22 = smov 0   ;;  %s2898_s23 = smov 0  }
   0x6 LB: > { %3436 = sst [smem:[#allocation6_spill]] %s2793_s20  ;;  %s2141_s14 = sadd.s32 4294967295, %s2805_s23   ;;  %s2805_s23 = sphi %s2898_s23, %s3445_s23   ;;  %s2801_s22 = sphi %s2896_s22, %s3447_s22   ;;  %s2797_s21 = sphi %s2894_s21, %s3449_s21   ;;  %s2793_s20 = sphi %s2892_s20, %s3448_s20  }
   0x7   : > { %3437 = sst [smem:[#allocation7_spill]] %s2801_s22  ;;  %s2142_s24 = sadd.s32 4294967294, %s2805_s23  }
   0x8   : > { %s2915_s25 = sadd.s32 1, %s2805_s23   ;;  %s362_s26 = sadd.s32 1, %s2801_s22 }
   0x9   : > { %3438 = sst [smem:[#allocation8_spill]] %s2915_s25  ;;  %s359_s27 = ssub.s32 %s2805_s23, %s2915_s25 }
   0xa   : > { %p372_p0 = scmp.ne.s32.totalorder %s2801_s22, %s2797_s21  ;;  %p360_p1 = scmp.eq.s32.totalorder %s359_s27, 0 }
   0xb   : > { %p373_p2 = scmp.eq.s32.totalorder %s2141_s14, 3  ;;  %p378_p3 = scmp.ne.s32.totalorder %s2797_s21, %s2793_s20 }
   0xc   : > { %p379_p4 = scmp.eq.s32.totalorder %s2142_s24, 3  ;;  %p2145_p7 = scmp.ge.s32.totalorder %s2805_s23, 1 }
   0xd   : > { %s2925_s28 = scalar_select %p360_p1, %s2801_s22, %s362_s26  }
   0xe   : > { %p2927_p5 = por %p373_p2, %p372_p0  ;;  %p2931_p6 = por %p379_p4, %p378_p3 }
   0xf   : > { %3439 = sst [smem:[#allocation9_spill]] %s2925_s28  ;;  %p454_p8 = scmp.lt.s32.totalorder %s2805_s23, 5 }
  0x10   : > { %s3441_s30 = scalar_select %p2931_p6, 1, 0 }
  0x11   : > { %p455_p9 = pnand %p2145_p7, %p454_p8 }
  0x12   : > { %3442 = sst [smem:[#allocation10_spill]] %s3441_s30  ;;  %v534_v1 = vld [vmem:[%s3417_s2] sm:$0xff] (!%p455_p9)  ;;  %v535_v2 = vld [vmem:[%s3417_s2 + $0x8] sm:$0xff] (!%p455_p9)  ;;  %v536_v3 = vld [vmem:[%s3417_s2 + $0x10] sm:$0xff] (!%p455_p9)  ;;  %s2946_s27 = sshll.u32 (!%p455_p9), %s2141_s14, 4  ;;  %vm549_vm0 = vcmask (!%p455_p9), 523264  }
  0x13   : > { %458 = sbr.rel (%p455_p9) target bundleno = 1172 (0x494), region = 80  ;;  %v2605_v4 = vpack.c.bf16 (!%p455_p9), %v535_v2, %v534_v1  ;;  %v537_v5 = vld [vmem:[%s3417_s2 + $0x18] sm:$0xff] (!%p455_p9)  ;;  %p507_p10 = scmp.lt.s32.totalorder (!%p455_p9), %s2946_s27, 63  ;;  %v538_v7 = vld [vmem:[%s3417_s2 + $0x20] sm:$0xff] (!%p455_p9)  ;;  %v539_v8 = vld [vmem:[%s3417_s2 + $0x28] sm:$0xff] (!%p455_p9)  ;;  %vm1001_vm1 = vcmask (!%p455_p9), 64512  }
  0x14   : > { %v2609_v6 = vpack.c.bf16 (!%p455_p9), %v537_v5, %v536_v3  ;;  %v775_v9 = vld [vmem:[%s3419_s4] sm:$0xff] (!%p455_p9)  ;;  %v776_v10 = vld [vmem:[%s3419_s4 + $0x8] sm:$0xff] (!%p455_p9)  ;;  %v777_v11 = vld [vmem:[%s3419_s4 + $0x10] sm:$0xff] (!%p455_p9)  ;;  %v2613_v14 = vpack.c.bf16 (!%p455_p9), %v539_v8, %v538_v7  ;;  %vm1858_vm2 = vcmask (!%p455_p9), 130048   ;;  %vm1960_vm3 = vcmask (!%p455_p9), 130112   ;;  %s504_s19 = sand.u32 (!%p455_p9), 1, %s2797_s21   ;;  %s3371_s14 = scalar_lea.hbm (!%p455_p9), %s3430_s15, %s2946_s27 }
  0x15   : > { %2606 = vmatprep.subr.bf16.mxu0 (!%p455_p9), %v2605_v4  ;;  %v778_v12 = vld [vmem:[%s3419_s4 + $0x18] sm:$0xff] (!%p455_p9)  ;;  %v2621_v13 = vpack.c.bf16 (!%p455_p9), %v776_v10, %v775_v9  ;;  %v779_v16 = vld [vmem:[%s3419_s4 + $0x20] sm:$0xff] (!%p455_p9)  ;;  %v780_v17 = vld [vmem:[%s3419_s4 + $0x28] sm:$0xff] (!%p455_p9)  ;;  %vm1967_vm4 = vcmask (!%p455_p9), 195712   ;;  %vm1974_vm5 = vcmask (!%p455_p9), 261312   ;;  %vm1981_vm6 = vcmask (!%p455_p9), 326912  }
  0x16   : > { %2608 = vmatpush3.bf16.msra.mxu0 (!%p455_p9), %v2605_v4  ;;  %v2625_v15 = vpack.c.bf16 (!%p455_p9), %v778_v12, %v777_v11  ;;  %v540_v18 = vld [vmem:[%s3417_s2 + $0x30] sm:$0xff] (!%p455_p9)  ;;  %v541_v19 = vld [vmem:[%s3417_s2 + $0x38] sm:$0xff] (!%p455_p9)  ;;  %v2629_v21 = vpack.c.bf16 (!%p455_p9), %v780_v17, %v779_v16  ;;  %v1000_v27 = vld [vmem:[%s3422_s7] sm:$0xff] (!%p455_p9)  ;;  %vm1988_vm7 = vcmask (!%p455_p9), 392512   ;;  %vm1995_vm8 = vcmask (!%p455_p9), 458112   ;;  %s505_s24 = scalar_lea.vmem (!%p455_p9), [#allocation3], %s504_s19 }
  0x17   : > { %2610 = vmatprep.subr.bf16.mxu0 (!%p455_p9), %v2609_v6  ;;  %2622 = vmatprep.subr.bf16.mxu1 (!%p455_p9), %v2621_v13  ;;  %v2617_v22 = vpack.c.bf16 (!%p455_p9), %v541_v19, %v540_v18  ;;  %v781_v23 = vld [vmem:[%s3419_s4 + $0x30] sm:$0xff] (!%p455_p9)  ;;  %v782_v24 = vld [vmem:[%s3419_s4 + $0x38] sm:$0xff] (!%p455_p9)  ;;  %v999_v58 = vld [vmem:[%s3421_s6] sm:$0xff] (!%p455_p9)  ;;  %vm2002_vm9 = vcmask (!%p455_p9), 523712   ;;  %vm2009_vm10 = vcmask (!%p455_p9), 589312   ;;  %vm2016_vm11 = vcmask (!%p455_p9), 654912  }
  0x18   : > { %2624 = vmatpush3.bf16.msra.mxu1 (!%p455_p9), %v2621_v13  ;;  %v2633_v25 = vpack.c.bf16 (!%p455_p9), %v782_v24, %v781_v23  ;;  %v1427_v59 = vld [vmem:[%s3424_s9] sm:$0xff] (!%p455_p9)  ;;  %v1428_v60 = vld [vmem:[%s3424_s9 + $0x8] sm:$0xff] (!%p455_p9)  ;;  %v1429_v61 = vld [vmem:[%s3424_s9 + $0x10] sm:$0xff] (!%p455_p9)  ;;  %vm2023_vm12 = vcmask (!%p455_p9), 720512   ;;  %vm2030_vm13 = vcmask (!%p455_p9), 786112   ;;  %vm2037_vm14 = vcmask (!%p455_p9), 851712  }
  0x19   : > { %2626 = vmatprep.subr.bf16.mxu1 (!%p455_p9), %v2625_v15  ;;  %v2637_v62 = vpack.c.bf16 (!%p455_p9), %v1428_v60, %v1427_v59  ;;  %v1430_v63 = vld [vmem:[%s3424_s9 + $0x18] sm:$0xff] (!%p455_p9)  ;;  %v1431_v1 = vld [vmem:[%s3424_s9 + $0x20] sm:$0xff] (!%p455_p9)  ;;  %v1432_v2 = vld [vmem:[%s3424_s9 + $0x28] sm:$0xff] (!%p455_p9)  ;;  %vm2044_vm15 = vcmask (!%p455_p9), 917312   ;;  %s2063_s22 = scalar_lea.sflag (!%p455_p9), [#allocation4], %s504_s19  ;;  %s2808_s16 = smov (!%p455_p9), [#allocation3]  }
  0x1a   : > { %s508_s26 = scalar_select %p507_p10, %s2946_s27, 63  ;;  %2612 = vmatpush3.bf16.msra.mxu0 %v2609_v6  ;;  %v2641_v0 = vpack.c.bf16 %v1430_v63, %v1429_v61  ;;  %v2645_v3 = vpack.c.bf16 %v1432_v2, %v1431_v1  ;;  %v1433_v4 = vld [vmem:[%s3424_s9 + $0x30] sm:$0xff]  ;;  %v1434_v5 = vld [vmem:[%s3424_s9 + $0x38] sm:$0xff]  ;;  %v1435_v7 = vld [vmem:[%s3424_s9 + $0x40] sm:$0xff] }
  0x1b   : > { %2614 = vmatprep.subr.bf16.mxu0 %v2613_v14  ;;  %v2649_v6 = vpack.c.bf16 %v1434_v5, %v1433_v4  ;;  %v1436_v8 = vld [vmem:[%s3424_s9 + $0x48] sm:$0xff]  ;;  %v1437_v10 = vld [vmem:[%s3424_s9 + $0x50] sm:$0xff]  ;;  %v1438_v11 = vld [vmem:[%s3424_s9 + $0x58] sm:$0xff]  ;;  %s2747_s17 = sshll.u32 %s2808_s16, 4  ;;  %s2748_s17 = int_to_ptr.vmem [resolvable:$false] %s2747_s17 }
  0x1c   : > { %s2147_s18 = sshll.u32 %s508_s26, 3  ;;  %2628 = vmatpush3.bf16.msra.mxu1 %v2625_v15  ;;  %v2653_v9 = vpack.c.bf16 %v1436_v8, %v1435_v7  ;;  %v2657_v12 = vpack.c.bf16 %v1438_v11, %v1437_v10  ;;  %v1439_v13 = vld [vmem:[%s3424_s9 + $0x60] sm:$0xff] }
  0x1d   : > { %s2986_s20 = scalar_lea.vmem %s3415_s0, %s2147_s18  ;;  %s2999_s28 = scalar_lea.vmem %s3416_s1, %s2147_s18  ;;  %2630 = vmatprep.subr.bf16.mxu1 %v2629_v21  ;;  %v3114_v16 = vld [vmem:[%s3418_s3] ss:$0 sm:$0xff] }
  0x1e   : > { %v518_v20 = vld [vmem:[%s2986_s20] sm:$0xff]  ;;  %2616 = vmatpush3.bf16.msra.mxu0 %v2613_v14  ;;  %v519_v28 = vld [vmem:[%s2986_s20 + $0x8] sm:$0xff]  ;;  %v520_v29 = vld [vmem:[%s2986_s20 + $0x10] sm:$0xff]  ;;  %s2749_s18 = scalar_lea.vmem %s2748_s17, 32 }
  0x1f   : > { %2393 = vmatprep.mubr.msk.f32.mxu0 %vm549_vm0, %v518_v20  ;;  %v759_v26 = vld [vmem:[%s2999_s28] sm:$0xff]  ;;  %2618 = vmatprep.subr.bf16.mxu0 %v2617_v22  ;;  %v760_v30 = vld [vmem:[%s2999_s28 + $0x8] sm:$0xff]  ;;  %v521_v31 = vld [vmem:[%s2986_s20 + $0x18] sm:$0xff] }
  0x20   : > { %2433 = vmatprep.mubr.msk.f32.mxu1 %vm549_vm0, %v759_v26  ;;  %2632 = vmatpush3.bf16.msra.mxu1 %v2629_v21  ;;  %v761_v32 = vld [vmem:[%s2999_s28 + $0x10] sm:$0xff]  ;;  %v522_v33 = vld [vmem:[%s2986_s20 + $0x20] sm:$0xff]  ;;  %v762_v34 = vld [vmem:[%s2999_s28 + $0x18] sm:$0xff] }
  0x21   : > { %2634 = vmatprep.subr.bf16.mxu1 %v2633_v25  ;;  %v523_v35 = vld [vmem:[%s2986_s20 + $0x28] sm:$0xff]  ;;  %v763_v36 = vld [vmem:[%s2999_s28 + $0x20] sm:$0xff]  ;;  %v524_v37 = vld [vmem:[%s2986_s20 + $0x30] sm:$0xff] }
  0x22   : > { %2620 = vmatpush3.bf16.msra.mxu0 %v2617_v22  ;;  %v764_v38 = vld [vmem:[%s2999_s28 + $0x28] sm:$0xff]  ;;  %v525_v39 = vld [vmem:[%s2986_s20 + $0x38] sm:$0xff]  ;;  %v765_v40 = vld [vmem:[%s2999_s28 + $0x30] sm:$0xff] }
  0x23   : > { %2457 = vmatprep.subr.mxu0 %v1000_v27  ;;  %v526_v41 = vld [vmem:[%s2986_s20 + $0x40] sm:$0xff]  ;;  %v766_v42 = vld [vmem:[%s2999_s28 + $0x38] sm:$0xff]  ;;  %v527_v43 = vld [vmem:[%s2986_s20 + $0x48] sm:$0xff] }
  0x24   : > { %2636 = vmatpush3.bf16.msra.mxu1 %v2633_v25  ;;  %v767_v44 = vld [vmem:[%s2999_s28 + $0x40] sm:$0xff]  ;;  %v528_v45 = vld [vmem:[%s2986_s20 + $0x50] sm:$0xff]  ;;  %v768_v46 = vld [vmem:[%s2999_s28 + $0x48] sm:$0xff] }
  0x25   : > { %2394 = vmatmul.mubr.msk.f32.vlgmr.msra.gmra.mrb[0].mxu0 %vm549_vm0, %v519_v28  ;;  %v529_v47 = vld [vmem:[%s2986_s20 + $0x58] sm:$0xff]  ;;  %v769_v48 = vld [vmem:[%s2999_s28 + $0x50] sm:$0xff]  ;;  %v530_v49 = vld [vmem:[%s2986_s20 + $0x60] sm:$0xff]  ;;  %2638 = vmatprep.subr.bf16.mxu1 %v2637_v62 }
  0x26   : > { %2396 = vmatprep.mubr.msk.f32.mxu0 %vm549_vm0, %v520_v29  ;;  %2458 = vmatpush3.msra.mxu0 %v1000_v27  ;;  %v770_v50 = vld [vmem:[%s2999_s28 + $0x58] sm:$0xff]  ;;  %v531_v51 = vld [vmem:[%s2986_s20 + $0x68] sm:$0xff]  ;;  %v771_v52 = vld [vmem:[%s2999_s28 + $0x60] sm:$0xff] }
  0x27   : > { %2434 = vmatmul.mubr.msk.f32.vlgmr.msra.gmra.mrb[0].mxu1 %vm549_vm0, %v760_v30  ;;  %v532_v53 = vld [vmem:[%s2986_s20 + $0x70] sm:$0xff]  ;;  %v772_v54 = vld [vmem:[%s2999_s28 + $0x68] sm:$0xff]  ;;  %v533_v55 = vld [vmem:[%s2986_s20 + $0x78] sm:$0xff]  ;;  %2483 = vmatprep.subr.mxu0 %v999_v58  ;;  %s2075_s20 = sshll.u32 %s505_s24, 4  ;;  %s3373_s20 = int_to_ptr.vmem [resolvable:$true] %s2075_s20 }
  0x28   : > { %2436 = vmatprep.mubr.msk.f32.mxu1 %vm549_vm0, %v761_v32  ;;  %v773_v56 = vld [vmem:[%s2999_s28 + $0x70] sm:$0xff]  ;;  %v774_v57 = vld [vmem:[%s2999_s28 + $0x78] sm:$0xff]  ;;  %2640 = vmatpush3.bf16.msra.mxu1 %v2637_v62  ;;  %v1440_v14 = vld [vmem:[%s3424_s9 + $0x68] sm:$0xff]  ;;  %s2743_s28 = scalar_lea.vmem %s3373_s20, 16  ;;  %p2750_p0 = scmp.lt.s32.totalorder %s3373_s20, %s2748_s17 }
  0x29   : > { %2397 = vmatmul.mubr.msk.f32.gmra.mrb[2].mxu0 %vm549_vm0, %v521_v31  ;;  %2642 = vmatprep.subr.bf16.mxu1 %v2641_v0  ;;  %v2661_v15 = vpack.c.bf16 %v1440_v14, %v1439_v13  ;;  %v2167_v4 = vld [vmem:[%s3420_s5] ss:$0 sm:$0xff]  ;;  %p2744_p11 = scmp.ne.s32.totalorder %s3373_s20, %s2743_s28  ;;  %p2751_p1 = scmp.lt.s32.totalorder %s2749_s18, %s2743_s28 }
  0x2a   : > { %2399 = vmatprep.mubr.msk.f32.mxu0 %vm549_vm0, %v522_v33 }
  0x2b   : > { %2437 = vmatmul.mubr.msk.f32.gmra.mrb[2].mxu1 %vm549_vm0, %v762_v34  ;;  %p2745_p12 = pnand %p2744_p11, %p2927_p5  ;;  %p2752_p2 = por %p2751_p1, %p2750_p0 }
  0x2c   : > { %2439 = vmatprep.mubr.msk.f32.mxu1 %vm549_vm0, %v763_v36  ;;  %2644 = vmatpush3.bf16.msra.mxu1 %v2641_v0 }
  0x2d   : > { %2400 = vmatmul.mubr.msk.f32.gmra.mrb[4].mxu0 %vm549_vm0, %v523_v35  ;;  %2646 = vmatprep.subr.bf16.mxu1 %v2645_v3  ;;  %p2746_p13 = pneg %p2745_p12 }
  0x2e   : > { %2402 = vmatprep.mubr.msk.f32.mxu0 %vm549_vm0, %v524_v37 }
  0x2f   : > { %2440 = vmatmul.mubr.msk.f32.gmra.mrb[4].mxu1 %vm549_vm0, %v764_v38  ;;  %p2753_p3 = pnand %p2752_p2, %p2746_p13 }
  0x30   : > { %2442 = vmatprep.mubr.msk.f32.mxu1 %vm549_vm0, %v765_v40  ;;  %2648 = vmatpush3.bf16.msra.mxu1 %v2645_v3 }
  0x31   : > { %2403 = vmatmul.mubr.msk.f32.gmra.mrb[6].mxu0 %vm549_vm0, %v525_v39  ;;  %2650 = vmatprep.subr.bf16.mxu1 %v2649_v6 }
  0x32   : > { %2405 = vmatprep.mubr.msk.f32.mxu0 %vm549_vm0, %v526_v41 }
  0x33   : > { %2443 = vmatmul.mubr.msk.f32.gmra.mrb[6].mxu1 %vm549_vm0, %v766_v42 }
  0x34   : > { %2445 = vmatprep.mubr.msk.f32.mxu1 %vm549_vm0, %v767_v44  ;;  %2652 = vmatpush3.bf16.msra.mxu1 %v2649_v6 }
  0x35   : > { %2406 = vmatmul.mubr.msk.f32.gmra.mrb[8].mxu0 %vm549_vm0, %v527_v43  ;;  %2654 = vmatprep.subr.bf16.mxu1 %v2653_v9 }
  0x36   : > { %2408 = vmatprep.mubr.msk.f32.mxu0 %vm549_vm0, %v528_v45 }
  0x37   : > { %2446 = vmatmul.mubr.msk.f32.gmra.mrb[8].mxu1 %vm549_vm0, %v768_v46 }
  0x38   : > { %2448 = vmatprep.mubr.msk.f32.mxu1 %vm549_vm0, %v769_v48  ;;  %2656 = vmatpush3.bf16.msra.mxu1 %v2653_v9 }
  0x39   : > { %2409 = vmatmul.mubr.msk.f32.gmra.mrb[10].mxu0 %vm549_vm0, %v529_v47  ;;  %2658 = vmatprep.subr.bf16.mxu1 %v2657_v12 }
  0x3a   : > { %2411 = vmatprep.mubr.msk.f32.mxu0 %vm549_vm0, %v530_v49 }
  0x3b   : > { %2449 = vmatmul.mubr.msk.f32.gmra.mrb[10].mxu1 %vm549_vm0, %v770_v50 }
  0x3c   : > { %2451 = vmatprep.mubr.msk.f32.mxu1 %vm549_vm0, %v771_v52  ;;  %2660 = vmatpush3.bf16.msra.mxu1 %v2657_v12 }
  0x3d   : > { %2412 = vmatmul.mubr.msk.f32.gmra.mrb[12].mxu0 %vm549_vm0, %v531_v51  ;;  %2662 = vmatprep.subr.bf16.mxu1 %v2661_v15 }
  0x3e   : > { %2414 = vmatprep.mubr.msk.f32.mxu0 %vm549_vm0, %v532_v53 }
  0x3f   : > { %2452 = vmatmul.mubr.msk.f32.gmra.mrb[12].mxu1 %vm549_vm0, %v772_v54 }
  0x40   : > { %2454 = vmatprep.mubr.msk.f32.mxu1 %vm549_vm0, %v773_v56  ;;  %2664 = vmatpush3.bf16.msra.mxu1 %v2661_v15 }
  0x41   : > { %2415 = vmatmul.mubr.msk.f32.gmra.mrb[14].mxu0 %vm549_vm0, %v533_v55 }
  0x43   : > { %2455 = vmatmul.mubr.msk.f32.gmra.mrb[14].mxu1 %vm549_vm0, %v774_v57 }
  0xf8   : > { %v2395_v17 = vpop.f32.mrb[0].mxu0 }
  0xf9   : > { %v670_v18 = vadd.f32 %v2395_v17, %v3114_v16  ;;  %v664_v19 = vpop.f32.mrb[1].mxu0 }
  0xfa   : > { %v665_v20 = vadd.f32 %v3114_v16, %v664_v19  ;;  %v3118_v21 = vpop.f32.mrb[0].mxu1 }
  0xfb   : > { %v904_v24 = vpop.f32.mrb[1].mxu1  ;;  %v744_v25 = vmax.f32 %v670_v18, 0.0 }
  0xfc   : > { %v743_v22 = vmax.f32 %v665_v20, 0.0  ;;  %v2398_v23 = vpop.f32.mrb[2].mxu0  ;;  %v905_v9 = vadd.f32 %v2167_v4, %v904_v24 }
  0xfd   : > { %v680_v26 = vadd.f32 %v2398_v23, %v3114_v16  ;;  %v674_v27 = vpop.f32.mrb[3].mxu0  ;;  %v910_v23 = vadd.f32 %v3118_v21, %v2167_v4 }
  0xfe   : > { %v675_v28 = vadd.f32 %v3114_v16, %v674_v27  ;;  %2459 = vmatprep.mubr.msk.f32.mxu0 %vm1001_vm1, %v743_v22  ;;  %v3124_v29 = vpop.f32.mrb[2].mxu1  ;;  %v983_v18 = vmax.f32 %v905_v9, 0.0 }
  0xff   : > { %2460 = vmatmul.mubr.msk.f32.vlgmr.msra.gmra.mrb[16].mxu0 %vm1001_vm1, %v744_v25  ;;  %v914_v32 = vpop.f32.mrb[3].mxu1  ;;  %v746_v33 = vmax.f32 %v680_v26, 0.0  ;;  %v984_v25 = vmax.f32 %v910_v23, 0.0  ;;  %v920_v26 = vadd.f32 %v3124_v29, %v2167_v4 }
 0x100   : > { %v745_v30 = vmax.f32 %v675_v28, 0.0  ;;  %2484 = vmatpush3.msra.mxu0 %v999_v58  ;;  %v2401_v31 = vpop.f32.mrb[4].mxu0  ;;  %v915_v19 = vadd.f32 %v2167_v4, %v914_v32 }
 0x101   : > { %v690_v34 = vadd.f32 %v2401_v31, %v3114_v16  ;;  %v684_v35 = vpop.f32.mrb[5].mxu0  ;;  %v986_v21 = vmax.f32 %v920_v26, 0.0 }
 0x102   : > { %v685_v36 = vadd.f32 %v3114_v16, %v684_v35  ;;  %2462 = vmatprep.mubr.msk.f32.mxu0 %vm1001_vm1, %v745_v30  ;;  %v3130_v37 = vpop.f32.mrb[4].mxu1  ;;  %v985_v24 = vmax.f32 %v915_v19, 0.0 }
 0x103   : > { %2463 = vmatmul.mubr.msk.f32.gmra.mrb[18].mxu0 %vm1001_vm1, %v746_v33  ;;  %v924_v40 = vpop.f32.mrb[5].mxu1  ;;  %v748_v41 = vmax.f32 %v690_v34, 0.0  ;;  %v930_v27 = vadd.f32 %v3130_v37, %v2167_v4 }
 0x104   : > { %v747_v38 = vmax.f32 %v685_v36, 0.0  ;;  %v2404_v39 = vpop.f32.mrb[6].mxu0 }
 0x105   : > { %v700_v42 = vadd.f32 %v2404_v39, %v3114_v16  ;;  %v694_v43 = vpop.f32.mrb[7].mxu0  ;;  %v988_v31 = vmax.f32 %v930_v27, 0.0 }
 0x106   : > { %v695_v44 = vadd.f32 %v3114_v16, %v694_v43  ;;  %2465 = vmatprep.mubr.msk.f32.mxu0 %vm1001_vm1, %v747_v38  ;;  %v3136_v45 = vpop.f32.mrb[6].mxu1 }
 0x107   : > { %2466 = vmatmul.mubr.msk.f32.gmra.mrb[20].mxu0 %vm1001_vm1, %v748_v41  ;;  %v934_v48 = vpop.f32.mrb[7].mxu1  ;;  %v750_v49 = vmax.f32 %v700_v42, 0.0  ;;  %v940_v32 = vadd.f32 %v3136_v45, %v2167_v4 }
 0x108   : > { %v749_v46 = vmax.f32 %v695_v44, 0.0  ;;  %v2407_v47 = vpop.f32.mrb[8].mxu0  ;;  %v935_v30 = vadd.f32 %v2167_v4, %v934_v48 }
 0x109   : > { %v710_v50 = vadd.f32 %v2407_v47, %v3114_v16  ;;  %v704_v51 = vpop.f32.mrb[9].mxu0  ;;  %v990_v35 = vmax.f32 %v940_v32, 0.0 }
 0x10a   : > { %v705_v52 = vadd.f32 %v3114_v16, %v704_v51  ;;  %2468 = vmatprep.mubr.msk.f32.mxu0 %vm1001_vm1, %v749_v46  ;;  %v2447_v53 = vpop.f32.mrb[8].mxu1  ;;  %v989_v33 = vmax.f32 %v935_v30, 0.0  ;;  %v1442_v51 = vld [vmem:[%s3424_s9 + $0x78] sm:$0xff] }
 0x10b   : > { %2469 = vmatmul.mubr.msk.f32.gmra.mrb[22].mxu0 %vm1001_vm1, %v750_v49  ;;  %v944_v56 = vpop.f32.mrb[9].mxu1  ;;  %v752_v57 = vmax.f32 %v710_v50, 0.0  ;;  %v950_v29 = vadd.f32 %v2447_v53, %v2167_v4  ;;  %v1441_v50 = vld [vmem:[%s3424_s9 + $0x70] sm:$0xff]  ;;  %v1611_v53 = vld [vmem:[%s3426_s11] sm:$0xff] }
 0x10c   : > { %v751_v54 = vmax.f32 %v705_v52, 0.0  ;;  %v2410_v55 = vpop.f32.mrb[10].mxu0  ;;  %v945_v34 = vadd.f32 %v2167_v4, %v944_v56  ;;  %v2665_v52 = vpack.c.bf16 %v1442_v51, %v1441_v50  ;;  %v3194_v56 = vld [vmem:[%s3423_s8] ss:$0 sm:$0xff] }
 0x10d   : > { %v720_v58 = vadd.f32 %v2410_v55, %v3114_v16  ;;  %v714_v59 = vpop.f32.mrb[11].mxu0  ;;  %v992_v38 = vmax.f32 %v950_v29, 0.0  ;;  %v2217_v50 = vld [vmem:[%s3425_s10] ss:$0 sm:$0xff] }
 0x10e   : > { %v715_v60 = vadd.f32 %v3114_v16, %v714_v59  ;;  %2471 = vmatprep.mubr.msk.f32.mxu0 %vm1001_vm1, %v751_v54  ;;  %v2450_v61 = vpop.f32.mrb[10].mxu1  ;;  %v991_v36 = vmax.f32 %v945_v34, 0.0  ;;  %2666 = vmatprep.subr.bf16.mxu1 %v2665_v52  ;;  %v1612_v54 = vld [vmem:[%s3426_s11 + $0x8] sm:$0xff] }
 0x10f   : > { %2472 = vmatmul.mubr.msk.f32.gmra.mrb[24].mxu0 %vm1001_vm1, %v752_v57  ;;  %v954_v0 = vpop.f32.mrb[11].mxu1  ;;  %v754_v1 = vmax.f32 %v720_v58, 0.0  ;;  %v960_v39 = vadd.f32 %v2450_v61, %v2167_v4  ;;  %2668 = vmatpush3.bf16.msra.mxu1 %v2665_v52  ;;  %v2669_v55 = vpack.c.bf16 %v1612_v54, %v1611_v53  ;;  %v1613_v61 = vld [vmem:[%s3426_s11 + $0x10] sm:$0xff] }
 0x110   : > { %v753_v62 = vmax.f32 %v715_v60, 0.0  ;;  %v2413_v63 = vpop.f32.mrb[12].mxu0  ;;  %v955_v37 = vadd.f32 %v2167_v4, %v954_v0 }
 0x111   : > { %v730_v2 = vadd.f32 %v2413_v63, %v3114_v16  ;;  %v724_v3 = vpop.f32.mrb[13].mxu0  ;;  %v994_v42 = vmax.f32 %v960_v39, 0.0  ;;  %2670 = vmatprep.subr.bf16.mxu1 %v2669_v55 }
 0x112   : > { %v725_v5 = vadd.f32 %v3114_v16, %v724_v3  ;;  %2474 = vmatprep.mubr.msk.f32.mxu0 %vm1001_vm1, %v753_v62  ;;  %v2453_v6 = vpop.f32.mrb[12].mxu1  ;;  %v1614_v62 = vld [vmem:[%s3426_s11 + $0x18] sm:$0xff] }
 0x113   : > { %2475 = vmatmul.mubr.msk.f32.gmra.mrb[26].mxu0 %vm1001_vm1, %v754_v1  ;;  %v964_v10 = vpop.f32.mrb[13].mxu1  ;;  %v756_v11 = vmax.f32 %v730_v2, 0.0  ;;  %v970_v43 = vadd.f32 %v2453_v6, %v2167_v4  ;;  %v1615_v6 = vld [vmem:[%s3426_s11 + $0x20] sm:$0xff] }
 0x114   : > { %v755_v7 = vmax.f32 %v725_v5, 0.0  ;;  %v2416_v8 = vpop.f32.mrb[14].mxu0  ;;  %v965_v41 = vadd.f32 %v2167_v4, %v964_v10 }
 0x115   : > { %v740_v12 = vadd.f32 %v2416_v8, %v3114_v16  ;;  %v734_v13 = vpop.f32.mrb[15].mxu0  ;;  %v996_v46 = vmax.f32 %v970_v43, 0.0 }
 0x116   : > { %v735_v14 = vadd.f32 %v3114_v16, %v734_v13  ;;  %2477 = vmatprep.mubr.msk.f32.mxu0 %vm1001_vm1, %v755_v7  ;;  %v2456_v15 = vpop.f32.mrb[14].mxu1  ;;  %v925_v16 = vadd.f32 %v2167_v4, %v924_v40  ;;  %v993_v40 = vmax.f32 %v955_v37, 0.0  ;;  %v995_v44 = vmax.f32 %v965_v41, 0.0  ;;  %v1616_v7 = vld [vmem:[%s3426_s11 + $0x28] sm:$0xff] }
 0x117   : > { %2478 = vmatmul.mubr.msk.f32.gmra.mrb[28].mxu0 %vm1001_vm1, %v756_v11  ;;  %v974_v20 = vpop.f32.mrb[15].mxu1  ;;  %v758_v22 = vmax.f32 %v740_v12, 0.0  ;;  %v980_v47 = vadd.f32 %v2456_v15, %v2167_v4  ;;  %v2677_v13 = vpack.c.bf16 %v1616_v7, %v1615_v6  ;;  %v1617_v15 = vld [vmem:[%s3426_s11 + $0x30] sm:$0xff] }
 0x118   : > { %v757_v17 = vmax.f32 %v735_v14, 0.0  ;;  %v987_v28 = vmax.f32 %v925_v16, 0.0  ;;  %v975_v45 = vadd.f32 %v2167_v4, %v974_v20  ;;  %v2673_v4 = vpack.c.bf16 %v1614_v62, %v1613_v61 }
 0x119   : > { %v998_v49 = vmax.f32 %v980_v47, 0.0 }
 0x11a   : > { %2480 = vmatprep.mubr.msk.f32.mxu0 %vm1001_vm1, %v757_v17  ;;  %v997_v48 = vmax.f32 %v975_v45, 0.0  ;;  %v1618_v17 = vld [vmem:[%s3426_s11 + $0x38] sm:$0xff] }
 0x11b   : > { %2481 = vmatmul.mubr.msk.f32.gmra.mrb[30].mxu0 %vm1001_vm1, %v758_v22 }
 0x11c   : > { %2485 = vmatprep.mubr.msk.f32.mxu0 %vm1001_vm1, %v983_v18 }
 0x11f   : > { %2486 = vmatmul.mubr.msk.f32.vlgmr.msra.gmra.mrb[16].mxu0 %vm1001_vm1, %v984_v25 }
 0x120   : > { %2488 = vmatprep.mubr.msk.f32.mxu0 %vm1001_vm1, %v985_v24  ;;  %v2681_v24 = vpack.c.bf16 %v1618_v17, %v1617_v15 }
 0x123   : > { %2489 = vmatmul.mubr.msk.f32.gmra.mrb[18].mxu0 %vm1001_vm1, %v986_v21 }
 0x124   : > { %2491 = vmatprep.mubr.msk.f32.mxu0 %vm1001_vm1, %v987_v28 }
 0x127   : > { %2492 = vmatmul.mubr.msk.f32.gmra.mrb[20].mxu0 %vm1001_vm1, %v988_v31 }
 0x128   : > { %2494 = vmatprep.mubr.msk.f32.mxu0 %vm1001_vm1, %v989_v33 }
 0x12b   : > { %2495 = vmatmul.mubr.msk.f32.gmra.mrb[22].mxu0 %vm1001_vm1, %v990_v35 }
 0x12c   : > { %2497 = vmatprep.mubr.msk.f32.mxu0 %vm1001_vm1, %v991_v36 }
 0x12f   : > { %2498 = vmatmul.mubr.msk.f32.gmra.mrb[24].mxu0 %vm1001_vm1, %v992_v38 }
 0x130   : > { %2500 = vmatprep.mubr.msk.f32.mxu0 %vm1001_vm1, %v993_v40 }
 0x133   : > { %2501 = vmatmul.mubr.msk.f32.gmra.mrb[26].mxu0 %vm1001_vm1, %v994_v42 }
 0x134   : > { %2503 = vmatprep.mubr.msk.f32.mxu0 %vm1001_vm1, %v995_v44 }
 0x137   : > { %2504 = vmatmul.mubr.msk.f32.gmra.mrb[28].mxu0 %vm1001_vm1, %v996_v46 }
 0x138   : > { %2506 = vmatprep.mubr.msk.f32.mxu0 %vm1001_vm1, %v997_v48 }
 0x13b   : > { %2507 = vmatmul.mubr.msk.f32.gmra.mrb[30].mxu0 %vm1001_vm1, %v998_v49  ;;  %vm2058_vm1 = vcmask 1048512  }
 0x1f2   : > { %v2487_v57 = vpop.f32.mrb[16].mxu0 }
 0x1f3   : > { %v1396_v58 = vadd.f32 %v2487_v57, %v3194_v56  ;;  %v1309_v59 = vpop.f32.mrb[17].mxu0 }
 0x1f4   : > { %v1395_v60 = vadd.f32 %v3194_v56, %v1309_v59 }
 0x1f5   : > { %v1412_v1 = vmax.f32 %v1396_v58, 0.0 }
 0x1f6   : > { %v1411_v63 = vmax.f32 %v1395_v60, 0.0  ;;  %v2490_v0 = vpop.f32.mrb[18].mxu0 }
 0x1f7   : > { %v1398_v2 = vadd.f32 %v2490_v0, %v3194_v56  ;;  %v1319_v3 = vpop.f32.mrb[19].mxu0 }
 0x1f8   : > { %v1397_v5 = vadd.f32 %v3194_v56, %v1319_v3  ;;  %2541 = vmatprep.mubr.f32.mxu1 %v1411_v63 }
 0x1f9   : > { %2542 = vmatmul.mubr.f32.vlgmr.msra.gmra.mrb[16].mxu1 %v1412_v1  ;;  %v1414_v10 = vmax.f32 %v1398_v2, 0.0 }
 0x1fa   : > { %v1413_v8 = vmax.f32 %v1397_v5, 0.0  ;;  %v2493_v9 = vpop.f32.mrb[20].mxu0  ;;  %2672 = vmatpush3.bf16.msra.mxu1 %v2669_v55 }
 0x1fb   : > { %v1400_v11 = vadd.f32 %v2493_v9, %v3194_v56  ;;  %v1329_v12 = vpop.f32.mrb[21].mxu0  ;;  %2674 = vmatprep.subr.bf16.mxu1 %v2673_v4 }
 0x1fc   : > { %v1399_v14 = vadd.f32 %v3194_v56, %v1329_v12  ;;  %2544 = vmatprep.mubr.f32.mxu1 %v1413_v8 }
 0x1fd   : > { %2545 = vmatmul.mubr.f32.gmra.mrb[18].mxu1 %v1414_v10  ;;  %v1416_v20 = vmax.f32 %v1400_v11, 0.0 }
 0x1fe   : > { %v1415_v18 = vmax.f32 %v1399_v14, 0.0  ;;  %v2496_v19 = vpop.f32.mrb[22].mxu0  ;;  %2676 = vmatpush3.bf16.msra.mxu1 %v2673_v4 }
 0x1ff   : > { %v1402_v22 = vadd.f32 %v2496_v19, %v3194_v56  ;;  %v1339_v23 = vpop.f32.mrb[23].mxu0  ;;  %2678 = vmatprep.subr.bf16.mxu1 %v2677_v13 }
 0x200   : > { %v1401_v16 = vadd.f32 %v3194_v56, %v1339_v23  ;;  %2547 = vmatprep.mubr.f32.mxu1 %v1415_v18 }
 0x201   : > { %2548 = vmatmul.mubr.f32.gmra.mrb[20].mxu1 %v1416_v20  ;;  %v1418_v27 = vmax.f32 %v1402_v22, 0.0 }
 0x202   : > { %v1417_v25 = vmax.f32 %v1401_v16, 0.0  ;;  %v2499_v26 = vpop.f32.mrb[24].mxu0  ;;  %2680 = vmatpush3.bf16.msra.mxu1 %v2677_v13 }
 0x203   : > { %v1404_v28 = vadd.f32 %v2499_v26, %v3194_v56  ;;  %v1349_v30 = vpop.f32.mrb[25].mxu0  ;;  %2682 = vmatprep.subr.bf16.mxu1 %v2681_v24 }
 0x204   : > { %v1403_v21 = vadd.f32 %v3194_v56, %v1349_v30  ;;  %2550 = vmatprep.mubr.f32.mxu1 %v1417_v25 }
 0x205   : > { %2551 = vmatmul.mubr.f32.gmra.mrb[22].mxu1 %v1418_v27  ;;  %v1420_v33 = vmax.f32 %v1404_v28, 0.0 }
 0x206   : > { %v1419_v31 = vmax.f32 %v1403_v21, 0.0  ;;  %v2502_v32 = vpop.f32.mrb[26].mxu0  ;;  %2684 = vmatpush3.bf16.msra.mxu1 %v2681_v24 }
 0x207   : > { %v1406_v34 = vadd.f32 %v2502_v32, %v3194_v56  ;;  %v1359_v35 = vpop.f32.mrb[27].mxu0 }
 0x208   : > { %v1405_v29 = vadd.f32 %v3194_v56, %v1359_v35  ;;  %2553 = vmatprep.mubr.f32.mxu1 %v1419_v31 }
 0x209   : > { %2554 = vmatmul.mubr.f32.gmra.mrb[24].mxu1 %v1420_v33  ;;  %v1422_v38 = vmax.f32 %v1406_v34, 0.0 }
 0x20a   : > { %v1421_v36 = vmax.f32 %v1405_v29, 0.0  ;;  %v2505_v37 = vpop.f32.mrb[28].mxu0  ;;  %v2807_v29 = vmov 0  }
 0x20b   : > { %v1408_v39 = vadd.f32 %v2505_v37, %v3194_v56  ;;  %v1369_v40 = vpop.f32.mrb[29].mxu0  ;;  %2741 = vset.pattern.permute.xlu1 %v2807_v29  ;;  %2742 = vset.pattern.permute.xlu0 %v2807_v29 }
 0x20c   : > { %v1407_v41 = vadd.f32 %v3194_v56, %v1369_v40  ;;  %2556 = vmatprep.mubr.f32.mxu1 %v1421_v36  ;;  %v3252_v36 = vld [vmem:[%s3427_s12] ss:$0 sm:$0xff] }
 0x20d   : > { %2557 = vmatmul.mubr.f32.gmra.mrb[26].mxu1 %v1422_v38  ;;  %v1424_v44 = vmax.f32 %v1408_v39, 0.0 }
 0x20e   : > { %v1423_v42 = vmax.f32 %v1407_v41, 0.0  ;;  %v2508_v43 = vpop.f32.mrb[30].mxu0  ;;  %v3259_v41 = vld [vmem:[%s3428_s13] ss:$0 sm:$0xff] }
 0x20f   : > { %v1410_v45 = vadd.f32 %v2508_v43, %v3194_v56  ;;  %v1379_v46 = vpop.f32.mrb[31].mxu0 }
 0x210   : > { %v1409_v47 = vadd.f32 %v3194_v56, %v1379_v46  ;;  %2559 = vmatprep.mubr.f32.mxu1 %v1423_v42 }
 0x211   : > { %2560 = vmatmul.mubr.f32.gmra.mrb[28].mxu1 %v1424_v44  ;;  %v1426_v49 = vmax.f32 %v1410_v45, 0.0 }
 0x212   : > { %v1425_v48 = vmax.f32 %v1409_v47, 0.0 }
 0x214   : > { %2562 = vmatprep.mubr.f32.mxu1 %v1425_v48 }
 0x215   : > { %2563 = vmatmul.mubr.f32.gmra.mrb[30].mxu1 %v1426_v49 }
 0x2cc   : > { %v2543_v51 = vpop.f32.mrb[16].mxu1 }
 0x2cd   : > { %v1522_v52 = vadd.f32 %v2543_v51, %v2217_v50  ;;  %v1516_v53 = vpop.f32.mrb[17].mxu1 }
 0x2ce   : > { %v1517_v54 = vadd.f32 %v2217_v50, %v1516_v53 }
 0x2cf   : > { %v1596_v58 = vmax.f32 %v1522_v52, 0.0 }
 0x2d0   : > { %v1595_v55 = vmax.f32 %v1517_v54, 0.0  ;;  %v2546_v57 = vpop.f32.mrb[18].mxu1 }
 0x2d1   : > { %v1532_v59 = vadd.f32 %v2546_v57, %v2217_v50  ;;  %v1526_v60 = vpop.f32.mrb[19].mxu1 }
 0x2d2   : > { %v1527_v56 = vadd.f32 %v2217_v50, %v1526_v60  ;;  %2581 = vmatprep.mubr.msk.f32.mxu1 %vm549_vm0, %v1595_v55 }
 0x2d3   : > { %2582 = vmatmul.mubr.msk.f32.vlgmr.msra.gmra.mrb[32].mxu1 %vm549_vm0, %v1596_v58  ;;  %v1598_v63 = vmax.f32 %v1532_v59, 0.0 }
 0x2d4   : > { %v1597_v61 = vmax.f32 %v1527_v56, 0.0  ;;  %v2549_v62 = vpop.f32.mrb[20].mxu1 }
 0x2d5   : > { %v1542_v0 = vadd.f32 %v2549_v62, %v2217_v50  ;;  %v1536_v1 = vpop.f32.mrb[21].mxu1 }
 0x2d6   : > { %v1537_v2 = vadd.f32 %v2217_v50, %v1536_v1  ;;  %2584 = vmatprep.mubr.msk.f32.mxu1 %vm549_vm0, %v1597_v61 }
 0x2d7   : > { %2585 = vmatmul.mubr.msk.f32.gmra.mrb[34].mxu1 %vm549_vm0, %v1598_v63  ;;  %v1600_v5 = vmax.f32 %v1542_v0, 0.0 }
 0x2d8   : > { %v1599_v3 = vmax.f32 %v1537_v2, 0.0  ;;  %v2552_v4 = vpop.f32.mrb[22].mxu1 }
 0x2d9   : > { %v1552_v6 = vadd.f32 %v2552_v4, %v2217_v50  ;;  %v1546_v7 = vpop.f32.mrb[23].mxu1 }
 0x2da   : > { %v1547_v8 = vadd.f32 %v2217_v50, %v1546_v7  ;;  %2587 = vmatprep.mubr.msk.f32.mxu1 %vm549_vm0, %v1599_v3 }
 0x2db   : > { %2588 = vmatmul.mubr.msk.f32.gmra.mrb[36].mxu1 %vm549_vm0, %v1600_v5  ;;  %v1602_v11 = vmax.f32 %v1552_v6, 0.0 }
 0x2dc   : > { %v1601_v9 = vmax.f32 %v1547_v8, 0.0  ;;  %v2555_v10 = vpop.f32.mrb[24].mxu1 }
 0x2dd   : > { %v1562_v12 = vadd.f32 %v2555_v10, %v2217_v50  ;;  %v1556_v13 = vpop.f32.mrb[25].mxu1 }
 0x2de   : > { %v1557_v14 = vadd.f32 %v2217_v50, %v1556_v13  ;;  %2590 = vmatprep.mubr.msk.f32.mxu1 %vm549_vm0, %v1601_v9 }
 0x2df   : > { %2591 = vmatmul.mubr.msk.f32.gmra.mrb[38].mxu1 %vm549_vm0, %v1602_v11  ;;  %v1604_v18 = vmax.f32 %v1562_v12, 0.0 }
 0x2e0   : > { %v1603_v15 = vmax.f32 %v1557_v14, 0.0  ;;  %v2558_v17 = vpop.f32.mrb[26].mxu1 }
 0x2e1   : > { %v1572_v19 = vadd.f32 %v2558_v17, %v2217_v50  ;;  %v1566_v20 = vpop.f32.mrb[27].mxu1 }
 0x2e2   : > { %v1567_v22 = vadd.f32 %v2217_v50, %v1566_v20  ;;  %2593 = vmatprep.mubr.msk.f32.mxu1 %vm549_vm0, %v1603_v15 }
 0x2e3   : > { %2594 = vmatmul.mubr.msk.f32.gmra.mrb[40].mxu1 %vm549_vm0, %v1604_v18  ;;  %v1606_v16 = vmax.f32 %v1572_v19, 0.0 }
 0x2e4   : > { %v1605_v23 = vmax.f32 %v1567_v22, 0.0  ;;  %v2561_v24 = vpop.f32.mrb[28].mxu1 }
 0x2e5   : > { %v1582_v25 = vadd.f32 %v2561_v24, %v2217_v50  ;;  %v1576_v26 = vpop.f32.mrb[29].mxu1 }
 0x2e6   : > { %v1577_v27 = vadd.f32 %v2217_v50, %v1576_v26  ;;  %2596 = vmatprep.mubr.msk.f32.mxu1 %vm549_vm0, %v1605_v23 }
 0x2e7   : > { %2597 = vmatmul.mubr.msk.f32.gmra.mrb[42].mxu1 %vm549_vm0, %v1606_v16  ;;  %v1608_v21 = vmax.f32 %v1582_v25, 0.0 }
 0x2e8   : > { %v1607_v28 = vmax.f32 %v1577_v27, 0.0  ;;  %v2564_v30 = vpop.f32.mrb[30].mxu1 }
 0x2e9   : > { %v1592_v31 = vadd.f32 %v2564_v30, %v2217_v50  ;;  %v1586_v32 = vpop.f32.mrb[31].mxu1 }
 0x2ea   : > { %v1587_v33 = vadd.f32 %v2217_v50, %v1586_v32  ;;  %2599 = vmatprep.mubr.msk.f32.mxu1 %vm549_vm0, %v1607_v28 }
 0x2eb   : > { %2600 = vmatmul.mubr.msk.f32.gmra.mrb[44].mxu1 %vm549_vm0, %v1608_v21  ;;  %v1610_v35 = vmax.f32 %v1592_v31, 0.0 }
 0x2ec   : > { %v1609_v34 = vmax.f32 %v1587_v33, 0.0 }
 0x2ee   : > { %2602 = vmatprep.mubr.msk.f32.mxu1 %vm549_vm0, %v1609_v34 }
 0x2ef   : > { %2603 = vmatmul.mubr.msk.f32.gmra.mrb[46].mxu1 %vm549_vm0, %v1610_v35  ;;  %vm2051_vm0 = vcmask 982912  }
 0x3a6   : > { %v2583_v37 = vpop.f32.mrb[32].mxu1 }
 0x3a7   : > { %v1746_v38 = vadd.f32 %v2583_v37, %v3252_v36  ;;  %v1740_v39 = vpop.f32.mrb[33].mxu1 }
 0x3a8   : > { %v1741_v40 = vadd.f32 %v3252_v36, %v1740_v39 }
 0x3a9   : > { %v1820_v42 = vmax.f32 %v1746_v38, 0.0 }
 0x3aa   : > { %v1819_v43 = vmax.f32 %v1741_v40, 0.0  ;;  %v2586_v44 = vpop.f32.mrb[34].mxu1 }
 0x3ab   : > { %v1756_v45 = vadd.f32 %v2586_v44, %v3252_v36  ;;  %v1750_v46 = vpop.f32.mrb[35].mxu1  ;;  %v1843_v47 = vmul.f32 %v3259_v41, %v1820_v42  ;;  %v1907_v42 = vld [vmem:[#allocation2] sm:$0x1] }
 0x3ac   : > { %v1751_v48 = vadd.f32 %v3252_v36, %v1750_v46  ;;  %v1842_v51 = vmul.f32 %v3259_v41, %v1819_v43 }
 0x3ad   : > { %v1822_v49 = vmax.f32 %v1756_v45, 0.0  ;;  %v1862_v50 = vsel %vm1858_vm2, %v1843_v47, 0.0 }
 0x3ae   : > { %v1821_v52 = vmax.f32 %v1751_v48, 0.0  ;;  %1863 = vadd.xlane.f32.xlu0 %v1862_v50  ;;  %v2589_v53 = vpop.f32.mrb[36].mxu1  ;;  %v1859_v56 = vsel %vm1858_vm2, %v1842_v51, 0.0 }
 0x3af   : > { %v1766_v54 = vadd.f32 %v2589_v53, %v3252_v36  ;;  %v1760_v55 = vpop.f32.mrb[37].mxu1  ;;  %v1845_v57 = vmul.f32 %v3259_v41, %v1822_v49 }
 0x3b0   : > { %v1761_v58 = vadd.f32 %v3252_v36, %v1760_v55  ;;  %v1844_v61 = vmul.f32 %v3259_v41, %v1821_v52 }
 0x3b1   : > { %v1824_v59 = vmax.f32 %v1766_v54, 0.0  ;;  %v1868_v60 = vsel %vm1858_vm2, %v1845_v57, 0.0 }
 0x3b2   : > { %v1823_v62 = vmax.f32 %v1761_v58, 0.0  ;;  %1869 = vadd.xlane.f32.xlu1 %v1868_v60  ;;  %v2592_v63 = vpop.f32.mrb[38].mxu1  ;;  %1860 = vadd.xlane.f32.xlu0 %v1859_v56  ;;  %v1865_v5 = vsel %vm1858_vm2, %v1844_v61, 0.0 }
 0x3b3   : > { %v1776_v0 = vadd.f32 %v2592_v63, %v3252_v36  ;;  %v1770_v1 = vpop.f32.mrb[39].mxu1  ;;  %v1847_v6 = vmul.f32 %v3259_v41, %v1824_v59 }
 0x3b4   : > { %v1771_v2 = vadd.f32 %v3252_v36, %v1770_v1  ;;  %v1846_v3 = vmul.f32 %v3259_v41, %v1823_v62  ;;  %v1913_v62 = vlaneseq }
 0x3b5   : > { %v1826_v4 = vmax.f32 %v1776_v0, 0.0  ;;  %v1874_v13 = vsel %vm1858_vm2, %v1847_v6, 0.0 }
 0x3b6   : > { %v1825_v7 = vmax.f32 %v1771_v2, 0.0  ;;  %v2595_v8 = vpop.f32.mrb[40].mxu1  ;;  %1866 = vadd.xlane.f32.xlu1 %v1865_v5  ;;  %v1871_v9 = vsel %vm1858_vm2, %v1846_v3, 0.0  ;;  %v3307_v1 = vshrl.u32 %v1913_v62, 7  ;;  %v3310_v3 = vand.u32 127, %v1913_v62 }
 0x3b7   : > { %v1786_v10 = vadd.f32 %v2595_v8, %v3252_v36  ;;  %v1780_v11 = vpop.f32.mrb[41].mxu1  ;;  %1872 = vadd.xlane.f32.xlu0 %v1871_v9  ;;  %v1849_v12 = vmul.f32 %v3259_v41, %v1826_v4 }
 0x3b8   : > { %v1781_v17 = vadd.f32 %v3252_v36, %v1780_v11  ;;  %v1848_v19 = vmul.f32 %v3259_v41, %v1825_v7  ;;  %v1915_v2 = vsub.s32 0, %v3307_v1  ;;  %v1955_v6 = vadd.s32 4294967288, %v3310_v3 }
 0x3b9   : > { %v1880_v14 = vsel %vm1858_vm2, %v1849_v12, 0.0  ;;  %v1828_v15 = vmax.f32 %v1786_v10, 0.0  ;;  %v1962_v7 = vadd.s32 4294967280, %v3310_v3  ;;  %v1953_v11 = vsub.s32 %v3310_v3, %v3307_v1 }
 0x3ba   : > { %v2598_v18 = vpop.f32.mrb[42].mxu1  ;;  %1875 = vadd.xlane.f32.xlu1 %v1874_v13  ;;  %v1827_v24 = vmax.f32 %v1781_v17, 0.0  ;;  %v1877_v26 = vsel %vm1858_vm2, %v1848_v19, 0.0  ;;  %v1958_v12 = vsub.s32 %v1955_v6, %v3307_v1  ;;  %v2039_v62 = vadd.s32 4294967192, %v3310_v3 }
 0x3bb   : > { %v1796_v20 = vadd.f32 %v2598_v18, %v3252_v36  ;;  %v1790_v22 = vpop.f32.mrb[43].mxu1  ;;  %1881 = vadd.xlane.f32.xlu0 %v1880_v14  ;;  %v1851_v27 = vmul.f32 %v3259_v41, %v1828_v15  ;;  %v1965_v14 = vsub.s32 %v1962_v7, %v3307_v1  ;;  %v1969_v18 = vadd.s32 4294967272, %v3310_v3 }
 0x3bc   : > { %v1791_v16 = vadd.f32 %v3252_v36, %v1790_v22  ;;  %v1850_v35 = vmul.f32 %v3259_v41, %v1827_v24  ;;  %v1976_v22 = vadd.s32 4294967264, %v3310_v3 }
 0x3bd   : > { %v1830_v23 = vmax.f32 %v1796_v20, 0.0  ;;  %v1886_v34 = vsel %vm1858_vm2, %v1851_v27, 0.0 }
 0x3be   : > { %v2601_v25 = vpop.f32.mrb[44].mxu1  ;;  %v1829_v31 = vmax.f32 %v1791_v16, 0.0  ;;  %v1883_v39 = vsel %vm1858_vm2, %v1850_v35, 0.0  ;;  %v1972_v16 = vsub.s32 %v1969_v18, %v3307_v1 }
 0x3bf   : > { %v1800_v28 = vpop.f32.mrb[45].mxu1  ;;  %1878 = vadd.xlane.f32.xlu0 %v1877_v26  ;;  %v1853_v30 = vmul.f32 %v3259_v41, %v1830_v23  ;;  %v1806_v32 = vadd.f32 %v2601_v25, %v3252_v36  ;;  %v1983_v25 = vadd.s32 4294967256, %v3310_v3 }
 0x3c0   : > { %v1801_v38 = vadd.f32 %v3252_v36, %v1800_v28  ;;  %v1852_v40 = vmul.f32 %v3259_v41, %v1829_v31  ;;  %v1979_v28 = vsub.s32 %v1976_v22, %v3307_v1  ;;  %v1990_v31 = vadd.s32 4294967248, %v3310_v3 }
 0x3c1   : > { %v1892_v21 = vsel %vm1858_vm2, %v1853_v30, 0.0  ;;  %v1832_v37 = vmax.f32 %v1806_v32, 0.0 }
 0x3c2   : > { %v2604_v33 = vpop.f32.mrb[46].mxu1  ;;  %v1831_v43 = vmax.f32 %v1801_v38, 0.0  ;;  %v1889_v45 = vsel %vm1858_vm2, %v1852_v40, 0.0  ;;  %v2004_v40 = vadd.s32 4294967232, %v3310_v3 }
 0x3c3   : > { %1887 = vadd.xlane.f32.xlu0 %v1886_v34  ;;  %v1810_v29 = vpop.f32.mrb[47].mxu1  ;;  %v1855_v46 = vmul.f32 %v3259_v41, %v1832_v37  ;;  %v1816_v47 = vadd.f32 %v2604_v33, %v3252_v36  ;;  %v1986_v34 = vsub.s32 %v1983_v25, %v3307_v1  ;;  %v1997_v37 = vadd.s32 4294967240, %v3310_v3 }
 0x3c4   : > { %v1811_v44 = vadd.f32 %v3252_v36, %v1810_v29  ;;  %v1854_v50 = vmul.f32 %v3259_v41, %v1831_v43  ;;  %v1993_v29 = vsub.s32 %v1990_v31, %v3307_v1 }
 0x3c5   : > { %v1898_v49 = vsel %vm1858_vm2, %v1855_v46, 0.0  ;;  %v1834_v51 = vmax.f32 %v1816_v47, 0.0  ;;  %v2000_v47 = vsub.s32 %v1997_v37, %v3307_v1 }
 0x3c6   : > { %v1833_v48 = vmax.f32 %v1811_v44, 0.0  ;;  %v1895_v52 = vsel %vm1858_vm2, %v1854_v50, 0.0  ;;  %v2011_v44 = vadd.s32 4294967224, %v3310_v3 }
 0x3c7   : > { %1884 = vadd.xlane.f32.xlu0 %v1883_v39  ;;  %v1857_v55 = vmul.f32 %v3259_v41, %v1834_v51  ;;  %v2018_v51 = vadd.s32 4294967216, %v3310_v3 }
 0x3c8   : > { %v1856_v53 = vmul.f32 %v3259_v41, %v1833_v48 }
 0x3c9   : > { %v1904_v57 = vsel %vm1858_vm2, %v1857_v55, 0.0 }
 0x3ca   : > { %v1901_v54 = vsel %vm1858_vm2, %v1856_v53, 0.0 }
 0x3cb   : > { %1910 = vperm.xlu1 %2741, %v1907_v42   ;;  %1890 = vadd.xlane.f32.xlu0 %v1889_v45 }
 0x3cf   : > { %1899 = vadd.xlane.f32.xlu0 %v1898_v49  ;;  %v2007_v49 = vsub.s32 %v2004_v40, %v3307_v1 }
 0x3d3   : > { %1896 = vadd.xlane.f32.xlu0 %v1895_v52 }
 0x3d7   : > { %1902 = vadd.xlane.f32.xlu0 %v1901_v54  ;;  %v2014_v54 = vsub.s32 %v2011_v44, %v3307_v1 }
 0x3db   : > { %1905 = vadd.xlane.f32.xlu0 %v1904_v57  ;;  %v2025_v57 = vadd.s32 4294967208, %v3310_v3 }
 0x3ef   : > { %1893 = vadd.xlane.f32.xlu1 %v1892_v21 }
 0x43b   : > { %v1864_v36 = vpop.xlane.xlu0 %1863 }
 0x43f   : > { %v1861_v58 = vpop.xlane.xlu0 %1860  ;;  %v1870_v59 = vpop.xlane.xlu1 %1869 }
 0x443   : > { %v1867_v56 = vpop.xlane.xlu1 %1866 }
 0x444   : > { %v1873_v60 = vpop.xlane.xlu0 %1872 }
 0x447   : > { %v1876_v63 = vpop.xlane.xlu1 %1875 }
 0x448   : > { %v1882_v61 = vpop.xlane.xlu0 %1881 }
 0x44b   : > { %v1911_v41 = vpop.permute.xlu1 %1910 }
 0x44c   : > { %v1879_v0 = vpop.xlane.xlu0 %1878  ;;  %v3312_v5 = vrot.slane %v1911_v41, %v1915_v2  ;;  %v2028_v2 = vsub.s32 %v2025_v57, %v3307_v1 }
 0x44e   : > { %v1917_v9 = vadd.f32 %v3312_v5, %v1861_v58  ;;  %v1918_v10 = vadd.f32 %v3312_v5, %v1864_v36  ;;  %v1919_v13 = vadd.f32 %v3312_v5, %v1867_v56  ;;  %v1920_v23 = vadd.f32 %v3312_v5, %v1870_v59 }
 0x44f   : > { %v1921_v26 = vadd.f32 %v3312_v5, %v1873_v60  ;;  %v1922_v32 = vadd.f32 %v3312_v5, %v1876_v63  ;;  %v1923_v39 = vadd.f32 %v3312_v5, %v1879_v0  ;;  %v1924_v46 = vadd.f32 %v3312_v5, %v1882_v61 }
 0x450   : > { %v1888_v4 = vpop.xlane.xlu0 %1887  ;;  %v1954_v15 = vrot.slane %v1917_v9, %v1953_v11  ;;  %v1959_v17 = vrot.slane %v1918_v10, %v1958_v12  ;;  %v1966_v20 = vrot.slane %v1919_v13, %v1965_v14  ;;  %v1973_v21 = vrot.slane %v1920_v23, %v1972_v16 }
 0x451   : > { %v1980_v35 = vrot.slane %v1921_v26, %v1979_v28  ;;  %v1987_v43 = vrot.slane %v1922_v32, %v1986_v34  ;;  %v1994_v48 = vrot.slane %v1923_v39, %v1993_v29  ;;  %v2001_v55 = vrot.slane %v1924_v46, %v2000_v47 }
 0x452   : > { %v1961_v24 = vsel %vm1960_vm3, %v1959_v17, %v1954_v15  ;;  %v2021_v58 = vsub.s32 %v2018_v51, %v3307_v1  ;;  %v2032_v60 = vadd.s32 4294967200, %v3310_v3  ;;  %v1926_v56 = vadd.f32 %v3312_v5, %v1888_v4 }
 0x453   : > { %v1968_v27 = vsel %vm1967_vm4, %v1966_v20, %v1961_v24  ;;  %v2046_v63 = vadd.s32 4294967184, %v3310_v3  ;;  %v2053_v0 = vadd.s32 4294967176, %v3310_v3  ;;  %v2042_v11 = vsub.s32 %v2039_v62, %v3307_v1 }
 0x454   : > { %v1885_v8 = vpop.xlane.xlu0 %1884  ;;  %v1975_v33 = vsel %vm1974_vm5, %v1973_v21, %v1968_v27  ;;  %v2035_v7 = vsub.s32 %v2032_v60, %v3307_v1  ;;  %v2015_v10 = vrot.slane %v1926_v56, %v2014_v54 }
 0x455   : > { %v1982_v38 = vsel %vm1981_vm6, %v1980_v35, %v1975_v33  ;;  %v1925_v50 = vadd.f32 %v3312_v5, %v1885_v8  ;;  %v2049_v13 = vsub.s32 %v2046_v63, %v3307_v1  ;;  %v2056_v15 = vsub.s32 %v2053_v0, %v3307_v1 }
 0x456   : > { %v1989_v45 = vsel %vm1988_vm7, %v1987_v43, %v1982_v38 }
 0x457   : > { %v1996_v52 = vsel %vm1995_vm8, %v1994_v48, %v1989_v45  ;;  %v2008_v36 = vrot.slane %v1925_v50, %v2007_v49 }
 0x458   : > { %v1891_v19 = vpop.xlane.xlu0 %1890  ;;  %v2003_v61 = vsel %vm2002_vm9, %v2001_v55, %v1996_v52 }
 0x459   : > { %v1927_v59 = vadd.f32 %v3312_v5, %v1891_v19  ;;  %v2010_v41 = vsel %vm2009_vm10, %v2008_v36, %v2003_v61 }
 0x45a   : > { %v2017_v17 = vsel %vm2016_vm11, %v2015_v10, %v2010_v41 }
 0x45b   : > { %v2022_v6 = vrot.slane %v1927_v59, %v2021_v58 }
 0x45c   : > { %v1900_v30 = vpop.xlane.xlu0 %1899 }
 0x45d   : > { %v1930_v12 = vadd.f32 %v3312_v5, %v1900_v30  ;;  %v2024_v20 = vsel %vm2023_vm12, %v2022_v6, %v2017_v17 }
 0x45f   : > { %v2043_v23 = vrot.slane %v1930_v12, %v2042_v11 }
 0x460   : > { %v1897_v42 = vpop.xlane.xlu0 %1896 }
 0x461   : > { %v1929_v8 = vadd.f32 %v3312_v5, %v1897_v42 }
 0x463   : > { %v2036_v22 = vrot.slane %v1929_v8, %v2035_v7 }
 0x464   : > { %v1903_v53 = vpop.xlane.xlu0 %1902 }
 0x465   : > { %v1931_v14 = vadd.f32 %v3312_v5, %v1903_v53 }
 0x467   : > { %v2050_v1 = vrot.slane %v1931_v14, %v2049_v13 }
 0x468   : > { %v1906_v4 = vpop.xlane.xlu0 %1905 }
 0x469   : > { %v1932_v18 = vadd.f32 %v3312_v5, %v1906_v4 }
 0x46b   : > { %v2057_v25 = vrot.slane %v1932_v18, %v2056_v15 }
 0x47c   : > { %v1894_v9 = vpop.xlane.xlu1 %1893 }
 0x47d   : > { %v1928_v3 = vadd.f32 %v3312_v5, %v1894_v9 }
 0x47f   : > { %v2029_v19 = vrot.slane %v1928_v3, %v2028_v2 }
 0x481   : > { %v2031_v24 = vsel %vm2030_vm13, %v2029_v19, %v2024_v20 }
 0x482   : > { %v2038_v16 = vsel %vm2037_vm14, %v2036_v22, %v2031_v24 }
 0x483   : > { %v2045_v5 = vsel %vm2044_vm15, %v2043_v23, %v2038_v16 }
 0x484   : > { %v2052_v26 = vsel %vm2051_vm0, %v2050_v1, %v2045_v5 }
 0x485   : > { %v2059_v27 = vsel %vm2058_vm1, %v2057_v25, %v2052_v26 }
 0x486   : > { %2061 = vst [vmem:[%s505_s24] sm:$0x1] %v2059_v27 }
 0x487   : > { %2756 = shalt.err (!%p2753_p3)
}
 0x488   : > { %s2757_s27 = scalar_lea.hbm %s3371_s14, 16  ;;  %s2761_s24 = scalar_lea.hbm %s3430_s15, 64 }
 0x489   : > { %p2758_p4 = scmp.ne.s32.totalorder %s3371_s14, %s2757_s27  ;;  %p2762_p9 = scmp.lt.u32.totalorder %s3371_s14, %s3430_s15 }
 0x48a   : > { %p2763_p10 = scmp.lt.u32.totalorder %s2761_s24, %s2757_s27  ;;  %p2765_p12 = scmp.lt.u32.totalorder %s2757_s27, %s3371_s14 }
 0x48b   : > { %p2759_p7 = pnand %p2758_p4, %p2927_p5 }
 0x48c   : > { %p2764_p11 = por %p2763_p10, %p2762_p9 }
 0x48d   : > { %p2760_p8 = pneg %p2759_p7 }
 0x48e   : > { %p2766_p13 = por %p2765_p12, %p2764_p11 }
 0x490   : > { %p2767_p0 = pnand %p2766_p13, %p2760_p8 }
 0x492   : > { %2770 = shalt.err (!%p2767_p0)
}
 0x493   : > { %2701 = dma.vmem_to_hbm [thread:$0]  (%p2927_p5), %s3373_s20, 16, %s3371_s14, %s2063_s22  }
 0x494 PF: > { %s3443_s28 = sld [smem:[#allocation6_spill]]  ;;  %p2707_p1 = scmp.ge.s32.totalorder %s2805_s23, 2 }
 0x496   : > { %p2704_p2 = pnand %p2707_p1, %p2931_p6 }
 0x49a   : > { %s2087_s17 = sand.u32 1, %s3443_s28  }
 0x49b   : > { %s2088_s18 = scalar_lea.sflag [#allocation4], %s2087_s17 }
 0x49c   : > { %2788 = dma.done.wait (!%p2704_p2), %s2088_s18, 16  }
 0x49d   : > { %2790 = vsyncadd (!%p2704_p2), %s2088_s18, 4294967280  ;;  %s3445_s23 = sld [smem:[#allocation8_spill]]  ;;  %s3446_s27 = sld [smem:[#allocation7_spill]] }
 0x49e   : > { %s3447_s22 = sld [smem:[#allocation9_spill]]  ;;  %s3448_s20 = smov %s2797_s21 }
 0x4a3   : > { %p27_p3 = scmp.ge.s32.totalorder %s3445_s23, 6   ;;  %s3449_s21 = smov %s3446_s27 }
 0x4a5   :  { %29 = sbr.rel (!%p27_p3) target bundleno = 6 (0x6), region = 118 }
 0x4ac   :  { %2092 = vsyncpa [#allocation4], 1 }
 0x4ad   :  { %2094 = vsyncpa [#allocation4 + $0x1], 1 }

</bundles_post_ra>
